<compile_context>
chip_gen: v6e
topology: v6e:2x2x1
jax: 0.10.0
libtpu: 0.0.40
codegen_flags: <defaults>
</compile_context>

<pallas_src>
import functools
from dataclasses import dataclass
from typing import Optional

import numpy as np
import jax
import jax.numpy as jnp
from jax import lax
from jax.experimental import pallas as pl
from jax.experimental.pallas import tpu as pltpu


@dataclass
class Node:
    x: jnp.ndarray
    pos: jnp.ndarray
    batch_idx: jnp.ndarray
    tree_idx_rot: Optional[jnp.ndarray] = None
    children: Optional["Node"] = None


def _round_up(v: int, m: int) -> int:
    return (v + m - 1) // m * m


def _cdiv(a: int, b: int) -> int:
    return (a + b - 1) // b


def _fit_pass1_rows(requested, SC, SD, out_pad, x_bytes, w_bytes, y_bytes,
                    budget_bytes=24 << 20):
    """Largest row tile (multiple of 8) whose pass-1 VMEM footprint fits."""
    resident = 2 * (SC + SD) * out_pad * w_bytes + 2 * out_pad * 4   # weights + bias (dbl-buf)
    per_row = 2 * (SC + SD) * x_bytes + 2 * out_pad * y_bytes + 4 * out_pad  # tiles + f32 acc spill
    avail = max(budget_bytes - resident, per_row * 8)
    rows = min(int(requested), avail // per_row)
    return max(8, (int(rows) // 8) * 8)


def _fit_pass2_rows(requested, out_pad, y_bytes, o_bytes, budget_bytes=16 << 20):
    per_row = 2 * out_pad * (y_bytes + o_bytes)
    rows = min(int(requested), budget_bytes // per_row)
    return max(8, (int(rows) // 8) * 8)


# ---------------------------------------------------------------------------
# Pass 1: split projection GEMM (+bias into y), global centered sum / sum-sq
# ---------------------------------------------------------------------------
def _proj_stats_kernel(x_ref, p_ref, wx_ref, wp_ref, b_ref,
                       y_ref, sum_ref, ssq_ref, *,
                       tile_rows, tiles_per_core, n_rows):
    c = pl.program_id(0)          # core-split axis ("parallel")
    i = pl.program_id(1)          # row-tile axis  ("arbitrary")

    @pl.when(i == 0)
    def _():
        sum_ref[...] = jnp.zeros_like(sum_ref)
        ssq_ref[...] = jnp.zeros_like(ssq_ref)

    cd = wx_ref.dtype
    yg = jnp.dot(x_ref[...].astype(cd), wx_ref[...],
                 preferred_element_type=jnp.float32)
    yg = yg + jnp.dot(p_ref[...].astype(cd), wp_ref[...],
                      preferred_element_type=jnp.float32)

    # Row-validity mask from the *logical* (unclamped) tile id: keeps partial
    # last blocks and clamped duplicate tiles out of the statistics.
    start = (c * tiles_per_core + i) * tile_rows
    row = start + lax.broadcasted_iota(jnp.int32, (tile_rows, 1), 0)
    valid = row < n_rows
    ygv = jnp.where(valid, yg, 0.0)

    # Centered (bias-free) stats in f32; per-core accumulator slice.
    sum_ref[...] += jnp.sum(ygv, axis=0, keepdims=True)
    ssq_ref[...] += jnp.sum(ygv * ygv, axis=0, keepdims=True)

    # Bias added once; downcast for the HBM intermediate (halves traffic).
    y_ref[...] = (yg + b_ref[...]).astype(y_ref.dtype)


# ---------------------------------------------------------------------------
# Pass 2: fused BatchNorm apply  out = y * scale + shift
# ---------------------------------------------------------------------------
def _bn_apply_kernel(y_ref, scale_ref, shift_ref, out_ref):
    y = y_ref[...].astype(jnp.float32)
    out_ref[...] = (y * scale_ref[...] + shift_ref[...]).astype(out_ref.dtype)


def ball_pooling(node: Node, params: dict, stride: int, eps: float = 1e-5,
                 *, compute_dtype=jnp.bfloat16,
                 tile_rows: int = 512, bn_tile_rows: int = 4096) -> Node:
    """JAX/Pallas equivalent of BallPooling.forward (training-mode BatchNorm)."""
    if stride == 1:
        return Node(x=node.x, pos=node.pos, batch_idx=node.batch_idx, children=node)

    x, pos, batch_idx = node.x, node.pos, node.batch_idx
    N, C = x.shape
    D = pos.shape[1]
    n = N // stride
    out_dim = params["bias"].shape[0]
    SC, SD = stride * C, stride * D
    out_pad = _round_up(out_dim, 128)
    pad_o = out_pad - out_dim

    # ---- weights: split feature / rel-pos blocks, lane-pad the out dim ------
    Wt = params["weight"].astype(jnp.float32).T                       # (SC+SD, out)
    Wx = jnp.pad(Wt[:SC], ((0, 0), (0, pad_o))).astype(compute_dtype)  # (SC, out_pad)
    Wp = jnp.pad(Wt[SC:], ((0, 0), (0, pad_o))).astype(compute_dtype)  # (SD, out_pad)
    b = jnp.pad(params["bias"].astype(jnp.float32), (0, pad_o)).reshape(1, out_pad)

    # ---- glue (tiny / needed anyway): centers + f32 relative positions ------
    pos_g = pos[: n * stride].reshape(n, stride, D)
    centers = jnp.mean(pos_g, axis=1)                                  # (n, D)
    rel = (pos_g - centers[:, None, :]).reshape(n, SD).astype(jnp.float32)
    xg = x[: n * stride].reshape(n, SC)       # pure view; cast in-kernel

    # ---- pass-1 tiling -------------------------------------------------------
    x_bytes = jnp.dtype(xg.dtype).itemsize
    w_bytes = jnp.dtype(compute_dtype).itemsize
    y_bytes = jnp.dtype(compute_dtype).itemsize
    t1 = _fit_pass1_rows(tile_rows, SC, SD, out_pad, x_bytes, w_bytes, y_bytes)
    t1 = min(t1, _round_up(n, 8))
    T = _cdiv(n, t1)                         # number of real row tiles
    ncs = 2 if T >= 2 else 1                 # megacore split (no-op on 1-TC chips)
    tpc = _cdiv(T, ncs)

    # Clamp keeps a possible last duplicate tile in-bounds (same core, same
    # data rewritten); its stats are masked out via the logical tile id.
    row_map = lambda c, i: (jnp.minimum(c * tpc + i, T - 1), 0)
    const_map = lambda c, i: (0, 0)
    acc_map = lambda c, i: (c, 0, 0)

    kernel1 = functools.partial(_proj_stats_kernel, tile_rows=t1,
                                tiles_per_core=tpc, n_rows=n)

    y, ps, pq = pl.pallas_call(
        kernel1,
        grid=(ncs, tpc),
        in_specs=[
            pl.BlockSpec((t1, SC), row_map),
            pl.BlockSpec((t1, SD), row_map),
            pl.BlockSpec((SC, out_pad), const_map),     # resident weights
            pl.BlockSpec((SD, out_pad), const_map),     # resident rel-pos weights
            pl.BlockSpec((1, out_pad), const_map),      # resident bias
        ],
        out_specs=(
            pl.BlockSpec((t1, out_pad), row_map),
            pl.BlockSpec((1, 8, out_pad), acc_map),     # per-core sum
            pl.BlockSpec((1, 8, out_pad), acc_map),     # per-core sum of squares
        ),
        out_shape=(
            jax.ShapeDtypeStruct((n, out_pad), compute_dtype),
            jax.ShapeDtypeStruct((ncs, 8, out_pad), jnp.float32),
            jax.ShapeDtypeStruct((ncs, 8, out_pad), jnp.float32),
        ),
        compiler_params=pltpu.CompilerParams(
            dimension_semantics=("parallel", "arbitrary")),
    )(xg, rel, Wx, Wp, b)

    # ---- glue: fold global batch stats into scale/shift ---------------------
    s1 = jnp.sum(ps[:, 0, :], axis=0)        # (out_pad,), bias-free sums
    s2 = jnp.sum(pq[:, 0, :], axis=0)
    inv_n = 1.0 / float(n)
    mean_g = s1 * inv_n
    var = jnp.maximum(s2 * inv_n - mean_g * mean_g, 0.0)   # biased (BN training)
    gamma = jnp.pad(params["gamma"].astype(jnp.float32), (0, pad_o))
    beta = jnp.pad(params["beta"].astype(jnp.float32), (0, pad_o))
    scale = gamma * lax.rsqrt(var + eps)
    shift = beta - (mean_g + b[0]) * scale                  # y includes the bias
    scale = scale.reshape(1, out_pad)
    shift = shift.reshape(1, out_pad)

    # ---- pass 2: large-tile, lane-dense, mem-bound elementwise normalize ----
    o_bytes = jnp.dtype(x.dtype).itemsize
    t2 = _fit_pass2_rows(bn_tile_rows, out_pad, y_bytes, o_bytes)
    t2 = min(t2, _round_up(n, 8))
    grid2 = _cdiv(n, t2)
    x_norm = pl.pallas_call(
        _bn_apply_kernel,
        grid=(grid2,),
        in_specs=[
            pl.BlockSpec((t2, out_pad), lambda i: (i, 0)),
            pl.BlockSpec((1, out_pad), lambda i: (0, 0)),
            pl.BlockSpec((1, out_pad), lambda i: (0, 0)),
        ],
        out_specs=pl.BlockSpec((t2, out_pad), lambda i: (i, 0)),
        out_shape=jax.ShapeDtypeStruct((n, out_pad), x.dtype),
        compiler_params=pltpu.CompilerParams(dimension_semantics=("parallel",)),
    )(y, scale, shift)

    x_pooled = x_norm[:, :out_dim] if pad_o else x_norm      # lane-strip only
    new_batch_idx = batch_idx[::stride][:n]
    # TODO(synk): BatchNorm1d running_mean/running_var buffer updates (training
    # side effect) are not emitted; eval-mode (running-stat) normalization is
    # not implemented.
    return Node(x=x_pooled, pos=centers.astype(pos.dtype),
                batch_idx=new_batch_idx, children=node)


# ---------------------------------------------------------------------------
# Pure-numpy (float64) reference mirroring the PyTorch forward.
# ---------------------------------------------------------------------------
def ball_pooling_ref_np(x, pos, batch_idx, params, stride, eps=1e-5):
    x = np.asarray(x, np.float64)
    pos = np.asarray(pos, np.float64)
    W = np.asarray(params["weight"], np.float64)
    b = np.asarray(params["bias"], np.float64)
    gamma = np.asarray(params["gamma"], np.float64)
    beta = np.asarray(params["beta"], np.float64)

    N, C = x.shape
    D = pos.shape[1]
    n = N // stride
    pos_g = pos[: n * stride].reshape(n, stride, D)
    centers = pos_g.mean(axis=1)
    rel = (pos_g - centers[:, None]).reshape(n, stride * D)
    inp = np.concatenate([x[: n * stride].reshape(n, stride * C), rel], axis=1)
    y = inp @ W.T + b
    mu = y.mean(axis=0)
    var = ((y - mu) ** 2).mean(axis=0)
    y = (y - mu) / np.sqrt(var + eps) * gamma + beta
    return y, centers, np.asarray(batch_idx)[::stride][:n]


if __name__ == "__main__":
    # N=52 leaf nodes, stride=2 -> n=26 balls; in_dim=16, out_dim=32 (pads to
    # 128 lanes), D=3.  tile_rows=8 -> 4 row tiles split 2x2 across the
    # "megacore" axis, with a partial last block (exercises the stats mask).
    N, in_dim, out_dim, stride, D = 52, 16, 32, 2, 3
    F = stride * in_dim + stride * D

    key = jax.random.PRNGKey(0)
    kx, kp, kw, kb, kg, kbt = jax.random.split(key, 6)
    x = jax.random.normal(kx, (N, in_dim), dtype=jnp.float32)
    pos = jax.random.normal(kp, (N, D), dtype=jnp.float32)
    batch_idx = jnp.concatenate([jnp.zeros((N // 2,), jnp.int32),
                                 jnp.ones((N - N // 2,), jnp.int32)])

    params = {
        "weight": jax.random.normal(kw, (out_dim, F), dtype=jnp.float32) / np.sqrt(F),
        "bias": jax.random.normal(kb, (out_dim,), dtype=jnp.float32) * 0.1,
        "gamma": 0.5 + jax.random.uniform(kg, (out_dim,), dtype=jnp.float32),
        "beta": jax.random.normal(kbt, (out_dim,), dtype=jnp.float32) * 0.1,
    }

    node = Node(x=x, pos=pos, batch_idx=batch_idx)
    y_ref, centers_ref, bidx_ref = ball_pooling_ref_np(x, pos, batch_idx, params, stride)

    # bf16 compute + bf16 intermediate (default fast path).
    out_bf16 = ball_pooling(node, params, stride, tile_rows=8)
    jax.block_until_ready((out_bf16.x, out_bf16.pos, out_bf16.batch_idx))
    np.testing.assert_allclose(np.asarray(out_bf16.x), y_ref, rtol=8e-2, atol=8e-2)
    np.testing.assert_allclose(np.asarray(out_bf16.pos), centers_ref, rtol=1e-5, atol=1e-5)
    np.testing.assert_array_equal(np.asarray(out_bf16.batch_idx), bidx_ref)

    # f32 compute + f32 intermediate: tighter check of the kernel structure.
    out_f32 = ball_pooling(node, params, stride, compute_dtype=jnp.float32, tile_rows=8)
    jax.block_until_ready(out_f32.x)
    np.testing.assert_allclose(np.asarray(out_f32.x), y_ref, rtol=2e-2, atol=2e-2)

    # Odd-tile-count case (N=44 -> n=22 -> 3 tiles of 8): exercises the clamped
    # duplicate tile on the megacore axis + masked stats.
    node2 = Node(x=x[:44], pos=pos[:44], batch_idx=batch_idx[:44])
    y_ref2, centers_ref2, bidx_ref2 = ball_pooling_ref_np(
        x[:44], pos[:44], batch_idx[:44], params, stride)
    out2 = ball_pooling(node2, params, stride, tile_rows=8)
    jax.block_until_ready(out2.x)
    np.testing.assert_allclose(np.asarray(out2.x), y_ref2, rtol=8e-2, atol=8e-2)
    np.testing.assert_allclose(np.asarray(out2.pos), centers_ref2, rtol=1e-5, atol=1e-5)
    np.testing.assert_array_equal(np.asarray(out2.batch_idx), bidx_ref2)

    # stride == 1 passthrough path.
    out_id = ball_pooling(node, params, 1)
    np.testing.assert_array_equal(np.asarray(out_id.x), np.asarray(x))

    print("KERNEL_OK")
</pallas_src>

<mosaic_0001>
module attributes {stable_mosaic.version = 11 : i64} {
  func.func @_proj_stats_kernel(%arg0: i32, %arg1: i32, %arg2: memref<8x32xf32, #tpu.memory_space<vmem>>, %arg3: memref<8x6xf32, #tpu.memory_space<vmem>>, %arg4: memref<32x128xbf16, #tpu.memory_space<vmem>>, %arg5: memref<6x128xbf16, #tpu.memory_space<vmem>>, %arg6: memref<1x128xf32, #tpu.memory_space<vmem>>, %arg7: memref<8x128xbf16, #tpu.memory_space<vmem>>, %arg8: memref<1x8x128xf32, #tpu.memory_space<vmem>>, %arg9: memref<1x8x128xf32, #tpu.memory_space<vmem>>) attributes {dimension_semantics = [#tpu.dimension_semantics<parallel>, #tpu.dimension_semantics<arbitrary>], iteration_bounds = array<i64: 2, 2>, scalar_prefetch = 0 : i64, scratch_operands = 0 : i64, tpu.core_type = #tpu.core_type<tc>, window_params = [{transform_indices = @transform_0, window_bounds = array<i64: 8, 32>}, {transform_indices = @transform_1, window_bounds = array<i64: 8, 6>}, {pipeline_mode = #tpu.pipeline_mode<synchronous>, transform_indices = @transform_2, window_bounds = array<i64: 32, 128>}, {pipeline_mode = #tpu.pipeline_mode<synchronous>, transform_indices = @transform_3, window_bounds = array<i64: 6, 128>}, {pipeline_mode = #tpu.pipeline_mode<synchronous>, transform_indices = @transform_4, window_bounds = array<i64: 1, 128>}, {transform_indices = @transform_5, window_bounds = array<i64: 8, 128>}, {transform_indices = @transform_6, window_bounds = array<i64: 1, 8, 128>}, {transform_indices = @transform_7, window_bounds = array<i64: 1, 8, 128>}]} {
    %c0_i32 = arith.constant 0 : i32
    %0 = arith.cmpi eq, %arg1, %c0_i32 : i32
    %1 = arith.extui %0 : i1 to i32
    %c0_i32_0 = arith.constant 0 : i32
    %2 = arith.cmpi ne, %1, %c0_i32_0 : i32
    scf.if %2 {
      %cst_28 = arith.constant 0.000000e+00 : f32
      %44 = vector.broadcast %cst_28 : f32 to vector<1x8x128xf32>
      %c0_29 = arith.constant 0 : index
      %c0_30 = arith.constant 0 : index
      %c0_31 = arith.constant 0 : index
      %45 = vector.load %arg8[%c0_29, %c0_30, %c0_31] : memref<1x8x128xf32, #tpu.memory_space<vmem>>, vector<1x8x128xf32>
      tpu.vector_store %arg8[%c0_29, %c0_30, %c0_31], %44 {strides = array<i32>} : memref<1x8x128xf32, #tpu.memory_space<vmem>>, vector<1x8x128xf32>,
      %cst_32 = arith.constant 0.000000e+00 : f32
      %46 = vector.broadcast %cst_32 : f32 to vector<1x8x128xf32>
      %c0_33 = arith.constant 0 : index
      %c0_34 = arith.constant 0 : index
      %c0_35 = arith.constant 0 : index
      %47 = vector.load %arg9[%c0_33, %c0_34, %c0_35] : memref<1x8x128xf32, #tpu.memory_space<vmem>>, vector<1x8x128xf32>
      tpu.vector_store %arg9[%c0_33, %c0_34, %c0_35], %46 {strides = array<i32>} : memref<1x8x128xf32, #tpu.memory_space<vmem>>, vector<1x8x128xf32>,
    } else {
    }
    %c0 = arith.constant 0 : index
    %c0_1 = arith.constant 0 : index
    %3 = vector.load %arg2[%c0, %c0_1] : memref<8x32xf32, #tpu.memory_space<vmem>>, vector<8x32xf32>
    %4 = arith.truncf %3 : vector<8x32xf32> to vector<8x32xbf16>
    %c0_2 = arith.constant 0 : index
    %c0_3 = arith.constant 0 : index
    %5 = vector.load %arg4[%c0_2, %c0_3] : memref<32x128xbf16, #tpu.memory_space<vmem>>, vector<32x128xbf16>
    %cst = arith.constant dense<0.000000e+00> : vector<8x128xf32>
    %6 = tpu.matmul %4, %5, %cst {dimension_numbers = #tpu.dot_dimension_numbers<[1], [0], [0], [1], [0, 0, 1, 1], [], []>} : vector<8x32xbf16>, vector<32x128xbf16>, vector<8x128xf32> -> vector<8x128xf32>
    %c0_4 = arith.constant 0 : index
    %c0_5 = arith.constant 0 : index
    %7 = vector.load %arg3[%c0_4, %c0_5] : memref<8x6xf32, #tpu.memory_space<vmem>>, vector<8x6xf32>
    %8 = arith.truncf %7 : vector<8x6xf32> to vector<8x6xbf16>
    %c0_6 = arith.constant 0 : index
    %c0_7 = arith.constant 0 : index
    %9 = vector.load %arg5[%c0_6, %c0_7] : memref<6x128xbf16, #tpu.memory_space<vmem>>, vector<6x128xbf16>
    %cst_8 = arith.constant dense<0.000000e+00> : vector<8x128xf32>
    %10 = tpu.matmul %8, %9, %cst_8 {dimension_numbers = #tpu.dot_dimension_numbers<[1], [0], [0], [1], [0, 0, 1, 1], [], []>} : vector<8x6xbf16>, vector<6x128xbf16>, vector<8x128xf32> -> vector<8x128xf32>
    %11 = arith.addf %6, %10 : vector<8x128xf32>
    %c2_i32 = arith.constant 2 : i32
    %12 = arith.muli %arg0, %c2_i32 : i32
    %13 = arith.addi %12, %arg1 : i32
    %c8_i32 = arith.constant 8 : i32
    %14 = arith.muli %13, %c8_i32 : i32
    %15 = tpu.iota {dimensions = array<i32: 0>} : vector<8x1xi32>
    %16 = vector.broadcast %14 : i32 to vector<8x1xi32>
    %17 = arith.addi %16, %15 : vector<8x1xi32>
    %c26_i32 = arith.constant 26 : i32
    %18 = vector.broadcast %c26_i32 : i32 to vector<8x1xi32>
    %19 = arith.cmpi slt, %17, %18 : vector<8x1xi32>
    %cst_9 = arith.constant 0.000000e+00 : f32
    %20 = vector.shape_cast %19 : vector<8x1xi1> to vector<8x1xi1>
    %21 = vector.broadcast %20 : vector<8x1xi1> to vector<8x128xi1>
    %22 = vector.broadcast %cst_9 : f32 to vector<8x128xf32>
    %23 = arith.select %21, %11, %22 : vector<8x128xi1>, vector<8x128xf32>
    %c0_10 = arith.constant 0 : index
    %c0_11 = arith.constant 0 : index
    %c0_12 = arith.constant 0 : index
    %24 = vector.load %arg8[%c0_10, %c0_11, %c0_12] : memref<1x8x128xf32, #tpu.memory_space<vmem>>, vector<1x8x128xf32>
    %cst_13 = arith.constant dense<0.000000e+00> : vector<128xf32>
    %25 = vector.multi_reduction <add>, %23, %cst_13 [0] : vector<8x128xf32> to vector<128xf32>
    %26 = vector.shape_cast %25 : vector<128xf32> to vector<1x128xf32>
    %27 = vector.shape_cast %26 : vector<1x128xf32> to vector<1x1x128xf32>
    %28 = vector.broadcast %27 : vector<1x1x128xf32> to vector<1x8x128xf32>
    %29 = arith.addf %24, %28 : vector<1x8x128xf32>
    %c0_14 = arith.constant 0 : index
    %c0_15 = arith.constant 0 : index
    %c0_16 = arith.constant 0 : index
    %30 = vector.load %arg8[%c0_14, %c0_15, %c0_16] : memref<1x8x128xf32, #tpu.memory_space<vmem>>, vector<1x8x128xf32>
    tpu.vector_store %arg8[%c0_14, %c0_15, %c0_16], %29 {strides = array<i32>} : memref<1x8x128xf32, #tpu.memory_space<vmem>>, vector<1x8x128xf32>,
    %c0_17 = arith.constant 0 : index
    %c0_18 = arith.constant 0 : index
    %c0_19 = arith.constant 0 : index
    %31 = vector.load %arg9[%c0_17, %c0_18, %c0_19] : memref<1x8x128xf32, #tpu.memory_space<vmem>>, vector<1x8x128xf32>
    %32 = arith.mulf %23, %23 : vector<8x128xf32>
    %cst_20 = arith.constant dense<0.000000e+00> : vector<128xf32>
    %33 = vector.multi_reduction <add>, %32, %cst_20 [0] : vector<8x128xf32> to vector<128xf32>
    %34 = vector.shape_cast %33 : vector<128xf32> to vector<1x128xf32>
    %35 = vector.shape_cast %34 : vector<1x128xf32> to vector<1x1x128xf32>
    %36 = vector.broadcast %35 : vector<1x1x128xf32> to vector<1x8x128xf32>
    %37 = arith.addf %31, %36 : vector<1x8x128xf32>
    %c0_21 = arith.constant 0 : index
    %c0_22 = arith.constant 0 : index
    %c0_23 = arith.constant 0 : index
    %38 = vector.load %arg9[%c0_21, %c0_22, %c0_23] : memref<1x8x128xf32, #tpu.memory_space<vmem>>, vector<1x8x128xf32>
    tpu.vector_store %arg9[%c0_21, %c0_22, %c0_23], %37 {strides = array<i32>} : memref<1x8x128xf32, #tpu.memory_space<vmem>>, vector<1x8x128xf32>,
    %c0_24 = arith.constant 0 : index
    %c0_25 = arith.constant 0 : index
    %39 = vector.load %arg6[%c0_24, %c0_25] : memref<1x128xf32, #tpu.memory_space<vmem>>, vector<1x128xf32>
    %40 = vector.broadcast %39 : vector<1x128xf32> to vector<8x128xf32>
    %41 = arith.addf %11, %40 : vector<8x128xf32>
    %42 = arith.truncf %41 : vector<8x128xf32> to vector<8x128xbf16>
    %c0_26 = arith.constant 0 : index
    %c0_27 = arith.constant 0 : index
    %43 = vector.load %arg7[%c0_26, %c0_27] : memref<8x128xbf16, #tpu.memory_space<vmem>>, vector<8x128xbf16>
    tpu.vector_store %arg7[%c0_26, %c0_27], %42 {strides = array<i32>} : memref<8x128xbf16, #tpu.memory_space<vmem>>, vector<8x128xbf16>,
    return
  }
  func.func @transform_0(%arg0: i32, %arg1: i32) -> (i32, i32) {
    %c2_i32 = arith.constant 2 : i32
    %0 = arith.muli %arg0, %c2_i32 : i32
    %1 = arith.addi %0, %arg1 : i32
    %c3_i32 = arith.constant 3 : i32
    %2 = arith.minsi %1, %c3_i32 : i32
    %c0_i32 = arith.constant 0 : i32
    %c0_i32_0 = arith.constant 0 : i32
    return %2, %c0_i32 : i32, i32
  }
  func.func @transform_1(%arg0: i32, %arg1: i32) -> (i32, i32) {
    %c2_i32 = arith.constant 2 : i32
    %0 = arith.muli %arg0, %c2_i32 : i32
    %1 = arith.addi %0, %arg1 : i32
    %c3_i32 = arith.constant 3 : i32
    %2 = arith.minsi %1, %c3_i32 : i32
    %c0_i32 = arith.constant 0 : i32
    %c0_i32_0 = arith.constant 0 : i32
    return %2, %c0_i32 : i32, i32
  }
  func.func @transform_2(%arg0: i32, %arg1: i32) -> (i32, i32) {
    %c0_i32 = arith.constant 0 : i32
    %c0_i32_0 = arith.constant 0 : i32
    %c0_i32_1 = arith.constant 0 : i32
    return %c0_i32, %c0_i32_0 : i32, i32
  }
  func.func @transform_3(%arg0: i32, %arg1: i32) -> (i32, i32) {
    %c0_i32 = arith.constant 0 : i32
    %c0_i32_0 = arith.constant 0 : i32
    %c0_i32_1 = arith.constant 0 : i32
    return %c0_i32, %c0_i32_0 : i32, i32
  }
  func.func @transform_4(%arg0: i32, %arg1: i32) -> (i32, i32) {
    %c0_i32 = arith.constant 0 : i32
    %c0_i32_0 = arith.constant 0 : i32
    %c0_i32_1 = arith.constant 0 : i32
    return %c0_i32, %c0_i32_0 : i32, i32
  }
  func.func @transform_5(%arg0: i32, %arg1: i32) -> (i32, i32) {
    %c2_i32 = arith.constant 2 : i32
    %0 = arith.muli %arg0, %c2_i32 : i32
    %1 = arith.addi %0, %arg1 : i32
    %c3_i32 = arith.constant 3 : i32
    %2 = arith.minsi %1, %c3_i32 : i32
    %c0_i32 = arith.constant 0 : i32
    %c0_i32_0 = arith.constant 0 : i32
    return %2, %c0_i32 : i32, i32
  }
  func.func @transform_6(%arg0: i32, %arg1: i32) -> (i32, i32, i32) {
    %c0_i32 = arith.constant 0 : i32
    %c0_i32_0 = arith.constant 0 : i32
    %c0_i32_1 = arith.constant 0 : i32
    return %arg0, %c0_i32, %c0_i32_0 : i32, i32, i32
  }
  func.func @transform_7(%arg0: i32, %arg1: i32) -> (i32, i32, i32) {
    %c0_i32 = arith.constant 0 : i32
    %c0_i32_0 = arith.constant 0 : i32
    %c0_i32_1 = arith.constant 0 : i32
    return %arg0, %c0_i32, %c0_i32_0 : i32, i32, i32
  }
}

</mosaic_0001>

<bundles_post_ra>
// kernel: tpu_custom_call.1
= control target key start
LH: loop header
LB: loop body
LE: loop exit
PB: predicated region body
PF: predicated region fallthrough
CT: control target
= control target key end

     0   :  { %s1527_s0 = inlined_call_operand.vmem [shape: f32[26,32], index: 0, kind: input, shape index: {}]   ;;  %s1528_s1 = inlined_call_operand.vmem [shape: f32[26,6], index: 1, kind: input, shape index: {}]   ;;  %s1529_s2 = inlined_call_operand.hbm [shape: bf16[32,128], index: 2, kind: input, shape index: {}]   ;;  %s1530_s3 = inlined_call_operand.vmem [shape: bf16[6,128], index: 3, kind: input, shape index: {}]   ;;  %s1531_s4 = inlined_call_operand.vmem [shape: f32[1,128], index: 4, kind: input, shape index: {}]   ;;  %s1532_s5 = inlined_call_operand.hbm [shape: bf16[26,128], index: 5, kind: output, shape index: {0}]   ;;  %s1533_s6 = inlined_call_operand.hbm [shape: f32[2,8,128], index: 6, kind: output, shape index: {1}]   ;;  %s1534_s7 = inlined_call_operand.hbm [shape: f32[2,8,128], index: 7, kind: output, shape index: {2}]  }
   0x1   :  { %1546 = sst [smem:[#allocation22_spill]] %s1529_s2 }
   0x2   :  { %13 = vsyncpa [#allocation3], 0 }
   0x3   :  { %14 = vsyncpa [#allocation4], 0 }
   0x4   :  { %16 = vsyncpa [#allocation4 + $0x1], 0 }
   0x5   :  { %17 = vsyncpa [#allocation7], 0 }
   0x6   :  { %19 = vsyncpa [#allocation7 + $0x1], 0  ;;  %s1211_s24 = smov 0   ;;  %s1213_s25 = smov 0  }
   0x7   :  { %s1215_s26 = smov 0   ;;  %s1217_s27 = smov 0  }
   0x8   :  { %s1219_s28 = smov 0   ;;  %s1221_s29 = smov 0  }
   0x9   :  { %s1223_s30 = smov 0   ;;  %s1225_s8 = smov 0  }
   0xa   :  { %s1227_s9 = smov 0   ;;  %s1229_s10 = smov 0  }
   0xb   :  { %s1231_s11 = smov 0  }
   0xc LB: > { %1547 = sst [smem:[#allocation12_spill]] %s1124_s25  ;;  %s1267_s12 = sadd.s32 4294967295, %s1160_s11   ;;  %s1160_s11 = sphi %s1231_s11, %s25_s11   ;;  %s1156_s10 = sphi %s1229_s10, %s1578_s10   ;;  %s1152_s9 = sphi %s1227_s9, %s1577_s9   ;;  %s1148_s8 = sphi %s1225_s8, %s1576_s8   ;;  %s1144_s30 = sphi %s1223_s30, %s1575_s30   ;;  %s1140_s29 = sphi %s1221_s29, %s1574_s29   ;;  %s1136_s28 = sphi %s1219_s28, %s1580_s28   ;;  %s1132_s27 = sphi %s1217_s27, %s1579_s27   ;;  %s1128_s26 = sphi %s1215_s26, %s1572_s26   ;;  %s1124_s25 = sphi %s1213_s25, %s1571_s25   ;;  %s1120_s24 = sphi %s1211_s24, %s1570_s24  }
   0xd   : > { %1548 = sst [smem:[#allocation13_spill]] %s1128_s26  ;;  %s1537_s13 = sadd.s32 4294967294, %s1160_s11  }
   0xe   : > { %1549 = sst [smem:[#allocation14_spill]] %s1132_s27  ;;  %s34_s14 = sadd.s32 1, %s1152_s9 }
   0xf   : > { %1550 = sst [smem:[#allocation15_spill]] %s1140_s29  ;;  %s37_s15 = sadd.s32 1, %s1156_s10 }
  0x10   : > { %1551 = sst [smem:[#allocation16_spill]] %s1152_s9  ;;  %p35_p0 = scmp.ge.s32.totalorder %s34_s14, 2 }
  0x11   : > { %1552 = sst [smem:[#allocation17_spill]] %s1156_s10  ;;  %s779_s16 = sshll.u32 %s1156_s10, 1 }
  0x12   : > { %s173_s17 = sadd.s32 %s1152_s9, %s779_s16  ;;  %s183_s18 = sadd.s32 1, %s1140_s29 }
  0x13   : > { %s1582_s14 = smov (%p35_p0, %s34_s14), 0  ;;  %s1584_s15 = smov (!%p35_p0, %s37_s15), %s1156_s10 }
  0x14   : > { %1553 = sst [smem:[#allocation18_spill]] %s1582_s14  ;;  %p174_p1 = scmp.lt.s32.totalorder %s173_s17, 3 }
  0x15   : > { %p193_p2 = scmp.ne.s32.totalorder %s1140_s29, %s1136_s28  ;;  %p39_p3 = scmp.ge.s32.totalorder %s1584_s15, 2 }
  0x16   : > { %p194_p4 = scmp.eq.s32.totalorder %s1267_s12, 3  ;;  %s1586_s17 = smov (!%p174_p1, %s173_s17), 3 }
  0x17   : > { %s1588_s15 = smov (%p39_p3, %s1584_s15), 0  ;;  %p199_p6 = scmp.ne.s32.totalorder %s1136_s28, %s1132_s27 }
  0x18   : > { %1554 = sst [smem:[#allocation19_spill]] %s1588_s15  ;;  %p1285_p5 = por %p194_p4, %p193_p2 }
  0x19   : > { %s780_s20 = sshll.u32 %s1588_s15, 1  ;;  %p1294_p7 = scmp.eq.s32.totalorder %s1537_s13, 3 }
  0x1a   : > { %s177_s22 = sadd.s32 %s780_s20, %s1582_s14  ;;  %s206_s23 = ssub.s32 %s1156_s10, %s1588_s15 }
  0x1b   : > { %p178_p8 = scmp.lt.s32.totalorder %s177_s22, 3  ;;  %p1303_p9 = por %p1294_p7, %p199_p6 }
  0x1c   : > { %p207_p10 = scmp.eq.s32.totalorder %s206_s23, 0  ;;  %s209_s9 = sadd.s32 1, %s1128_s26 }
  0x1d   : > { %s1557_s16 = scalar_select %p1303_p9, 1, 0 }
  0x1e   : > { %s1590_s22 = smov (!%p178_p8, %s177_s22), 3  ;;  %p219_p11 = scmp.ne.s32.totalorder %s1128_s26, %s1124_s25 }
  0x1f   : > { %s1309_s27 = scalar_select %p207_p10, %s1128_s26, %s209_s9  }
  0x20   : > { %s180_s13 = ssub.s32 %s1586_s17, %s1590_s22  ;;  %p225_p13 = scmp.ne.s32.totalorder %s1124_s25, %s1120_s24 }
  0x21   : > { %1558 = sst [smem:[#allocation20_spill]] %s1309_s27  ;;  %p181_p12 = scmp.eq.s32.totalorder %s180_s13, 0 }
  0x22   : > { %p1317_p0 = por %p219_p11, %p194_p4  ;;  %p781_p1 = scmp.ge.s32.totalorder %s1160_s11, 1 }
  0x23   : > { %s1323_s15 = scalar_select %p181_p12, %s1140_s29, %s183_s18  }
  0x24   : > { %s1559_s20 = scalar_select %p1317_p0, 1, 0 }
  0x25   : > { %1560 = sst [smem:[#allocation21_spill]] %s1323_s15  ;;  %p1327_p2 = por %p225_p13, %p1294_p7 }
  0x26   : > { %p259_p3 = scmp.lt.s32.totalorder %s1160_s11, 5  ;;  %p859_p6 = scmp.eq.s32.totalorder %s1267_s12, 0 }
  0x27   : > { %s1561_s23 = scalar_select %p1327_p2, 1, 0 }
  0x28   : > { %p1333_p8 = pnand %p781_p1, %p259_p3  ;;  %s1162_s24 = smov [#allocation2]  }
  0x29   : > { %s271_s13 = sshll.u32 %s1162_s24, 4  ;;  %s272_s13 = int_to_ptr.vmem [resolvable:$true] %s271_s13 }
  0x2a   : > { %p845_p4 = pneg %p1333_p8  ;;  %s969_s17 = scalar_lea.vmem %s272_s13, 256 }
  0x2b   : > { %p970_p7 = scmp.ne.s32.totalorder %s272_s13, %s969_s17  ;;  %p977_p2 = scmp.lt.s32.totalorder %s272_s13, %s272_s13 }
  0x2c   : > { %p846_p10 = pnand %p859_p6, %p845_p4  ;;  %p978_p9 = scmp.lt.s32.totalorder %s969_s17, %s969_s17 }
  0x2e   : > { %p960_p11 = pneg %p846_p10  ;;  %p979_p0 = por %p978_p9, %p977_p2 }
  0x30   : > { %p972_p12 = pnand %p970_p7, %p960_p11 }
  0x32   : > { %p973_p13 = pneg %p972_p12 }
  0x34   : > { %p980_p1 = pnand %p979_p0, %p973_p13 }
  0x36   : > { %983 = shalt.err (!%p980_p1)
}
  0x37   : > { %s1163_s18 = smov 64   ;;  %s1164_s21 = smov 4  }
  0x38   : > { %s1563_s2 = sld [smem:[#allocation22_spill]] }
  0x3a   : > { %323 = sbr.rel (%p1333_p8) target bundleno = 348 (0x15c), region = 40 }
  0x3e   : > { %848 = dma.hbm_to_vmem [thread:$0]  (!%p846_p10), %s1563_s2, 256, %s272_s13, [#allocation3], %s1163_s18, %s1163_s18, %s1164_s21  }
  0x3f   : > { %1107 = dma.done.wait (%p859_p6), [#allocation3], 256  }
  0x40   : > { %1109 = vsyncadd (%p859_p6), [#allocation3], 4294967040  ;;  %s1543_s24 = sand.u32 1, %s1136_s28   ;;  %s366_s17 = sand.u32 1, %s1124_s25  }
  0x41   : > { %s1354_s10 = sshll.u32 %s1543_s24, 2  ;;  %s787_s14 = sshll.u32 %s366_s17, 3 }
  0x42   : > { %s789_s9 = sshll.u32 %s1148_s8, 1  ;;  %s361_s17 = scalar_lea.vmem [#allocation5], %s1354_s10 }
  0x43   : > { %s1358_s13 = sadd.s32 %s1144_s30, %s789_s9  ;;  %s1372_s25 = scalar_lea.vmem [#allocation6], %s787_s14 }
  0x44   : > { %p378_p9 = scmp.lt.s32.totalorder %s1358_s13, 3  ;;  %s1374_s9 = scalar_lea.vmem [#allocation8], %s787_s14 }
  0x45   : > { %p799_p0 = scmp.ne.s32.totalorder %s1144_s30, 0 }
  0x46   : > { %s1362_s18 = scalar_select %p378_p9, %s1358_s13, 3 }
  0x47   : > { %408 = sbr.rel (%p799_p0) target bundleno = 78 (0x4e), region = 48 }
  0x48   : > { %s381_s21 = scalar_select %p378_p9, %s1362_s18, 3 }
  0x4a   : > { %s793_s22 = sshll.u32 %s381_s21, 3 }
  0x4b   : > { %s383_s29 = scalar_lea.vmem %s1527_s0, %s793_s22  ;;  %s395_s26 = scalar_lea.vmem %s1528_s1, %s793_s22 }
  0x4c   : > { %v1165_v0 = vmov 0.0  }
  0x4d   : > { %409 = vst [vmem:[%s1372_s25] sm:$0xff] %v1165_v0  ;;  %410 = vst [vmem:[%s1374_s9] sm:$0xff] %v1165_v0 }
  0x4e PF: > { %v419_v1 = vld [vmem:[%s1530_s3] sm:$0x7]  ;;  %vm424_vm0 = vcmask 1042432   ;;  %v1166_v2 = vmov 0.0   ;;  %v956_v4 = vld [vmem:[#allocation2 + $0x8] sm:$0xff]   ;;  %vm1167_vm1 = vmmov 0   ;;  %v527_v10 = vlaneseq }
  0x4f   : > { %821 = vmatprep.subr.bf16.mxu0 %v1166_v2  ;;  %v426_v3 = vsel %vm424_vm0, %v419_v1, 0  ;;  %827 = vmatprep.subr.bf16.mxu1 %v1166_v2  ;;  %v417_v5 = vld [vmem:[%s395_s26] sm:$0xff]  ;;  %vm420_vm2 = vcmask 48128   ;;  %vm480_vm3 = vcmask 261120   ;;  %s805_s26 = sshll.u32 %s1358_s13, 3  ;;  %s811_s30 = sshll.u32 %s1362_s18, 6 }
  0x50   : > { %822 = vmatpush3.bf16.msra.mxu0 %v426_v3  ;;  %823 = vmatprep.mubr.msk.bf16.mxu0 %vm1167_vm1, %v1166_v2  ;;  %v418_v6 = vpack.c.bf16 %v417_v5, %v417_v5  ;;  %v957_v7 = vld [vmem:[#allocation2] sm:$0xff]   ;;  %v528_v11 = vshrl.u32 %v527_v10, 7  ;;  %v529_v12 = vstv %s805_s26  ;;  %s592_s24 = sshll.u32 %s361_s17, 4  ;;  %s1392_s21 = scalar_lea.hbm %s1532_s5, %s811_s30  ;;  %s1394_s24 = int_to_ptr.vmem [resolvable:$true] %s592_s24 }
  0x51   : > { %828 = vmatpush3.bf16.msra.mxu1 %v956_v4  ;;  %831 = vmatprep.mubr.msk.bf16.mxu1 %vm1167_vm1, %v1166_v2  ;;  %v411_v8 = vld [vmem:[%s383_s29] sm:$0xff]  ;;  %s1564_s18 = sand.u32 1, %s1136_s28   ;;  %s984_s2 = scalar_lea.vmem %s1394_s24, 64 }
  0x52   : > { %829 = vmatprep.subr.bf16.mxu1 %v1166_v2  ;;  %v412_v9 = vpack.c.bf16 %v411_v8, %v411_v8  ;;  %v530_v14 = vadd.s32 %v529_v12, %v528_v11  ;;  %v806_v18 = vld [vmem:[%s1531_s4] ss:$0 sm:$0xff]  ;;  %s565_s22 = scalar_lea.sflag [#allocation4], %s1564_s18  ;;  %p985_p2 = scmp.ne.s32.totalorder %s1394_s24, %s984_s2 }
  0x53   : > { %824 = vmatmul.mubr.msk.bf16.vlgmr.msra.gmra.mxu0 %vm420_vm2, %v418_v6  ;;  %s1168_s15 = smov [#allocation5]  }
  0x54   : > { %vm531_vm4 = vcmp.lt.s32.totalorder %v530_v14, 26  ;;  %p986_p3 = pnand %p985_p2, %p1285_p5  ;;  %s988_s26 = sshll.u32 %s1168_s15, 4  ;;  %s989_s26 = int_to_ptr.vmem [resolvable:$false] %s988_s26 }
  0x55   : > { %830 = vmatpush3.bf16.msra.mxu1 %v957_v7  ;;  %s990_s27 = scalar_lea.vmem %s989_s26, 128  ;;  %p991_p8 = scmp.lt.s32.totalorder %s1394_s24, %s989_s26 }
  0x56   : > { %p987_p6 = pneg %p986_p3  ;;  %p992_p4 = scmp.lt.s32.totalorder %s990_s27, %s984_s2 }
  0x58   : > { %832 = vmatmul.mubr.msk.bf16.vlgmr.msra.gmra.mxu1 %vm480_vm3, %v412_v9  ;;  %p993_p10 = por %p992_p4, %p991_p8 }
  0x5a   : > { %p994_p11 = pnand %p993_p10, %p987_p6 }
 0x113   : > { %v462_v13 = vpop.f32.mrf.mxu0 }
 0x115   : > { %v825_v15 = vpop.f32.mrf.mxu0 }
 0x117   : > { %v465_v16 = vpop.f32.mrf.mxu0 }
 0x118   : > { %v518_v17 = vpop.f32.mrf.mxu1 }
 0x119   : > { %v519_v19 = vadd.f32 %v518_v17, %v462_v13  ;;  %v826_v20 = vpop.f32.mrf.mxu0 }
 0x11a   : > { %v833_v21 = vpop.f32.mrf.mxu1 }
 0x11b   : > { %v534_v22 = vsel %vm531_vm4, %v519_v19, 0.0  ;;  %v561_v23 = vadd.f32 %v806_v18, %v519_v19 }
 0x11c   : > { %v536_v24 = vrot.slane %v534_v22, 4  ;;  %v545_v25 = vmul.f32 %v534_v22, %v534_v22  ;;  %v521_v26 = vpop.f32.mrf.mxu1 }
 0x11d   : > { %v562_v27 = vpack.c.bf16 %v561_v23, %v561_v23 }
 0x11e   : > { %v537_v28 = vadd.f32 %v536_v24, %v534_v22  ;;  %v546_v29 = vrot.slane %v545_v25, 4  ;;  %v834_v30 = vpop.f32.mrf.mxu1 }
 0x11f   : > { %563 = vst [vmem:[%s361_s17] sm:$0xf] %v562_v27 }
 0x120   : > { %v538_v31 = vrot.slane %v537_v28, 2  ;;  %v547_v32 = vadd.f32 %v546_v29, %v545_v25 }
 0x121   : > { %997 = shalt.err (!%p994_p11)
}
 0x122   : > { %s998_s10 = scalar_lea.hbm %s1392_s21, 64  ;;  %s1002_s30 = scalar_lea.hbm %s1532_s5, 256 }
 0x123   : > { %p999_p7 = scmp.ne.s32.totalorder %s1392_s21, %s998_s10  ;;  %p1003_p1 = scmp.lt.s32.totalorder %s1392_s21, %s1532_s5 }
 0x124   : > { %p1004_p9 = scmp.lt.s32.totalorder %s1002_s30, %s998_s10 }
 0x125   : > { %p1000_p12 = pnand %p999_p7, %p1285_p5 }
 0x126   : > { %p1005_p0 = por %p1004_p9, %p1003_p1 }
 0x127   : > { %p1001_p13 = pneg %p1000_p12 }
 0x129   : > { %p1006_p2 = pnand %p1005_p0, %p1001_p13 }
 0x12b   : > { %1009 = shalt.err (!%p1006_p2)
}
 0x12c   : > { %839 = dma.vmem_to_hbm [thread:$0]  (%p1285_p5), %s1394_s24, 64, %s1392_s21, %s565_s22   ;;  %v539_v33 = vadd.f32 %v538_v31, %v537_v28  ;;  %v548_v34 = vrot.slane %v547_v32, 2  ;;  %v535_v37 = vld [vmem:[%s1372_s25] sm:$0xff]  ;;  %v544_v40 = vld [vmem:[%s1374_s9] sm:$0xff] }
 0x12d   : > { %s569_s18 = sand.u32 1, %s1267_s12   ;;  %s812_s2 = sshll.u32 %s1148_s8, 7 }
 0x12e   : > { %v540_v35 = vrot.slane %v539_v33, 1  ;;  %v549_v36 = vadd.f32 %v548_v34, %v547_v32  ;;  %s605_s15 = sshll.u32 %s1372_s25, 4  ;;  %s618_s19 = sshll.u32 %s1374_s9, 4  ;;  %s1431_s15 = int_to_ptr.vmem [resolvable:$true] %s605_s15  ;;  %s1439_s19 = int_to_ptr.vmem [resolvable:$true] %s618_s19 }
 0x12f   : > { %s1429_s10 = scalar_lea.hbm %s1533_s6, %s812_s2  ;;  %s1437_s24 = scalar_lea.hbm %s1534_s7, %s812_s2 }
 0x130   : > { %v550_v38 = vrot.slane %v549_v36, 1  ;;  %v541_v39 = vadd.f32 %v540_v35, %v539_v33  ;;  %s1441_s21 = scalar_lea.sflag [#allocation7], %s569_s18  ;;  %s1010_s22 = scalar_lea.vmem %s1431_s15, 128 }
 0x131   : > { %p1011_p5 = scmp.ne.s32.totalorder %s1431_s15, %s1010_s22  ;;  %p1565_p3 = scmp.ne.s32.totalorder %s1559_s20, 0 }
 0x132   : > { %v542_v41 = vadd.f32 %v541_v39, %v535_v37  ;;  %v551_v42 = vadd.f32 %v550_v38, %v549_v36  ;;  %s1169_s17 = smov [#allocation6]  }
 0x133   : > { %p1012_p6 = pnand %p1011_p5, %p1565_p3  ;;  %s1014_s29 = sshll.u32 %s1169_s17, 4  ;;  %s1015_s29 = int_to_ptr.vmem [resolvable:$false] %s1014_s29 }
 0x134   : > { %543 = vst [vmem:[%s1372_s25] sm:$0xff] %v542_v41  ;;  %v552_v43 = vadd.f32 %v551_v42, %v544_v40  ;;  %s1016_s30 = scalar_lea.vmem %s1015_s29, 256  ;;  %p1017_p4 = scmp.lt.s32.totalorder %s1431_s15, %s1015_s29 }
 0x135   : > { %p1013_p8 = pneg %p1012_p6  ;;  %p1018_p10 = scmp.lt.s32.totalorder %s1016_s30, %s1010_s22 }
 0x137   : > { %p1019_p11 = por %p1018_p10, %p1017_p4 }
 0x139   : > { %p1020_p7 = pnand %p1019_p11, %p1013_p8 }
 0x13b   : > { %1023 = shalt.err (!%p1020_p7)
}
 0x13c   : > { %s1024_s25 = scalar_lea.hbm %s1429_s10, 128  ;;  %s1028_s18 = scalar_lea.hbm %s1533_s6, 256 }
 0x13d   : > { %p1025_p12 = scmp.ne.s32.totalorder %s1429_s10, %s1024_s25  ;;  %p1029_p9 = scmp.lt.s32.totalorder %s1429_s10, %s1533_s6 }
 0x13e   : > { %p1030_p0 = scmp.lt.s32.totalorder %s1028_s18, %s1024_s25 }
 0x13f   : > { %p1026_p13 = pnand %p1025_p12, %p1565_p3 }
 0x140   : > { %p1031_p2 = por %p1030_p0, %p1029_p9 }
 0x141   : > { %p1027_p1 = pneg %p1026_p13 }
 0x143   : > { %p1032_p5 = pnand %p1031_p2, %p1027_p1 }
 0x145   : > { %1035 = shalt.err (!%p1032_p5)
}
 0x146   : > { %840 = dma.vmem_to_hbm [thread:$0]  (%p1565_p3), %s1431_s15, 128, %s1429_s10, %s1441_s21   ;;  %553 = vst [vmem:[%s1374_s9] sm:$0xff] %v552_v43 }
 0x147   : > { %s1036_s27 = scalar_lea.vmem %s1439_s19, 128  ;;  %s1170_s8 = smov [#allocation8]  }
 0x148   : > { %p1037_p6 = scmp.ne.s32.totalorder %s1439_s19, %s1036_s27  ;;  %s1040_s12 = sshll.u32 %s1170_s8, 4  ;;  %s1041_s12 = int_to_ptr.vmem [resolvable:$false] %s1040_s12 }
 0x149   : > { %s1042_s22 = scalar_lea.vmem %s1041_s12, 256  ;;  %p1043_p10 = scmp.lt.s32.totalorder %s1439_s19, %s1041_s12 }
 0x14a   : > { %p1038_p8 = pnand %p1037_p6, %p1565_p3  ;;  %p1044_p11 = scmp.lt.s32.totalorder %s1042_s22, %s1036_s27 }
 0x14c   : > { %p1039_p4 = pneg %p1038_p8  ;;  %p1045_p7 = por %p1044_p11, %p1043_p10 }
 0x14e   : > { %p1046_p12 = pnand %p1045_p7, %p1039_p4 }
 0x150   : > { %1049 = shalt.err (!%p1046_p12)
}
 0x151   : > { %s1050_s15 = scalar_lea.hbm %s1437_s24, 128  ;;  %s1054_s17 = scalar_lea.hbm %s1534_s7, 256 }
 0x152   : > { %p1051_p13 = scmp.ne.s32.totalorder %s1437_s24, %s1050_s15  ;;  %p1055_p0 = scmp.lt.s32.totalorder %s1437_s24, %s1534_s7 }
 0x153   : > { %p1056_p2 = scmp.lt.s32.totalorder %s1054_s17, %s1050_s15 }
 0x154   : > { %p1052_p1 = pnand %p1051_p13, %p1565_p3 }
 0x155   : > { %p1057_p5 = por %p1056_p2, %p1055_p0 }
 0x156   : > { %p1053_p9 = pneg %p1052_p1 }
 0x158   : > { %p1058_p6 = pnand %p1057_p5, %p1053_p9 }
 0x15a   : > { %1061 = shalt.err (!%p1058_p6)
}
 0x15b   : > { %841 = dma.vmem_to_hbm [thread:$0]  (%p1565_p3), %s1439_s19, 128, %s1437_s24, %s1441_s21  }
 0x15c PF: > { %s1566_s25 = sld [smem:[#allocation14_spill]]  ;;  %p861_p8 = scmp.ge.s32.totalorder %s1160_s11, 2 }
 0x15d   : > { %p1567_p4 = scmp.ne.s32.totalorder %s1557_s16, 0 }
 0x15f   : > { %p850_p10 = pnand %p861_p8, %p1567_p4 }
 0x161   : > { %p851_p11 = pneg %p850_p10 }
 0x162   : > { %s630_s14 = sand.u32 1, %s1566_s25  }
 0x163   : > { %s631_s13 = scalar_lea.sflag [#allocation4], %s630_s14 }
 0x164   : > { %1111 = dma.done.wait (%p851_p11), %s631_s13, 64  }
 0x165   : > { %1113 = vsyncadd (%p851_p11), %s631_s13, 4294967232  ;;  %s1568_s18 = sadd.s32 4294967294, %s1160_s11   ;;  %p1569_p7 = scmp.ne.s32.totalorder %s1561_s23, 0 }
 0x166   : > { %s639_s20 = sand.u32 1, %s1568_s18  }
 0x167   : > { %p853_p12 = pnand %p861_p8, %p1569_p7  ;;  %s640_s19 = scalar_lea.sflag [#allocation7], %s639_s20 }
 0x169   : > { %p854_p13 = pneg %p853_p12 }
 0x16b   : > { %1115 = dma.done.wait (%p854_p13), %s640_s19, 256  }
 0x16c   : > { %1117 = vsyncadd (%p854_p13), %s640_s19, 4294967040  ;;  %s25_s11 = sadd.s32 1, %s1160_s11   ;;  %s1570_s24 = sld [smem:[#allocation12_spill]] }
 0x16d   : > { %p22_p3 = scmp.ge.s32.totalorder %s25_s11, 6   ;;  %s1571_s25 = sld [smem:[#allocation13_spill]] }
 0x16e   : > { %s1572_s26 = sld [smem:[#allocation20_spill]]  ;;  %s1579_s27 = smov %s1136_s28 }
 0x16f   : > { %s1573_s16 = sld [smem:[#allocation15_spill]] }
 0x170   : > { %s1574_s29 = sld [smem:[#allocation21_spill]] }
 0x171   : > { %s1575_s30 = sld [smem:[#allocation16_spill]]  ;;  %24 = sbr.rel (!%p22_p3) target bundleno = 12 (0xc), region = 119 }
 0x172   : > { %s1576_s8 = sld [smem:[#allocation17_spill]] }
 0x173   : > { %s1577_s9 = sld [smem:[#allocation18_spill]] }
 0x174   : > { %s1578_s10 = sld [smem:[#allocation19_spill]] }
 0x175   : > { %s1580_s28 = smov %s1573_s16 }
 0x176   :  { %654 = vsyncpa [#allocation3], 1 }
 0x177   :  { %656 = vsyncpa [#allocation3 + $0x1], 1 }
 0x178   :  { %657 = vsyncpa [#allocation4], 1 }
 0x179   :  { %659 = vsyncpa [#allocation4 + $0x1], 1 }
 0x17a   :  { %660 = vsyncpa [#allocation7], 1 }
 0x17b   :  { %662 = vsyncpa [#allocation7 + $0x1], 1 }

</bundles_post_ra>
